<compile_context>
chip_gen: v5e
topology: v5e:2x2
jax: 0.10.0
libtpu: 0.0.40
codegen_flags: <defaults>
</compile_context>

<pallas_src>
import jax
import jax.numpy as jnp
from jax.experimental import pallas as pl
from jax.experimental.pallas import tpu as pltpu

BN_EPS = 1e-5
LEAKY_SLOPE = 0.01
DROP_P = 0.5
TILE_F = 128  # lane-dense feature tile (output last-dim multiple of 128)


def deep_search_linear_kernel(x_ref, w_ref, gamma_ref, beta_ref, drop_ref, o_ref):
    # ---- Linear (bias omitted: cancelled exactly by training-mode BN mean) ----
    x = x_ref[...].astype(jnp.float32)            # (N, F_in)
    w = w_ref[...].astype(jnp.float32)            # (TILE_F, F_in) torch layout tile
    # Contract x[:,k] with w[:,k]  ->  (N, TILE_F); no transpose needed, MXU handles it.
    y = jax.lax.dot_general(
        x, w,
        dimension_numbers=(((1,), (1,)), ((), ())),
        preferred_element_type=jnp.float32,
    )

    # ---- BatchNorm1d, training stats, single pass over the tile ----
    n_inv = 1.0 / y.shape[0]
    mean = jnp.sum(y, axis=0, keepdims=True) * n_inv            # (1, TILE_F)
    mean_sq = jnp.sum(y * y, axis=0, keepdims=True) * n_inv     # (1, TILE_F)
    var = jnp.maximum(mean_sq - mean * mean, 0.0)               # biased var (training)
    scale = gamma_ref[...] * jax.lax.rsqrt(var + BN_EPS)        # (1, TILE_F)
    shift = beta_ref[...] - mean * scale                        # (1, TILE_F)
    y = y * scale + shift

    # ---- LeakyReLU fused with Dropout(p=0.5): drop_ref holds 0.0 or 1/(1-p) ----
    y = jnp.where(y >= 0.0, y, LEAKY_SLOPE * y) * drop_ref[...]

    o_ref[...] = y.astype(o_ref.dtype)


def deep_search_linear(x, w, b, gamma, beta, dropout_key):
    """x: (N, F_in) f32; w: (F_out, F_in) torch layout; returns (N, F_out) f32.

    `b` is accepted for interface parity but never used: adding a per-feature
    constant before training-mode BatchNorm has zero effect on the output.
    """
    del b
    N, F_in = x.shape
    F_out = w.shape[0]
    F_pad = pl.cdiv(F_out, TILE_F) * TILE_F
    n_tiles = F_pad // TILE_F

    # Pad the feature axis once so every output store is a full, unmasked 128-lane
    # vector store. (For a real model, do this padding at weight-load time.)
    w_p = jnp.pad(w, ((0, F_pad - F_out), (0, 0)))
    gamma_p = jnp.pad(gamma, (0, F_pad - F_out)).reshape(1, F_pad)
    beta_p = jnp.pad(beta, (0, F_pad - F_out)).reshape(1, F_pad)

    # Dropout keep-factor precomputed with the JAX PRNG (portable, fuses to one mul
    # in-kernel). TODO(synk): bits come from JAX's PRNG, not torch's RNG (same
    # Bernoulli(0.5)/scale-by-2 semantics, different bit stream); an in-kernel
    # pltpu.prng_* path would save this HBM stream but does not lower in interpret mode.
    keep = jax.random.bernoulli(dropout_key, 1.0 - DROP_P, (N, F_pad))
    drop_factor = keep.astype(jnp.float32) * (1.0 / (1.0 - DROP_P))

    out = pl.pallas_call(
        deep_search_linear_kernel,
        out_shape=jax.ShapeDtypeStruct((N, F_pad), jnp.float32),
        grid_spec=pltpu.PrefetchScalarGridSpec(
            num_scalar_prefetch=0,
            grid=(n_tiles,),
            in_specs=[
                pl.BlockSpec((N, F_in), lambda j: (0, 0)),        # x (reused per tile)
                pl.BlockSpec((TILE_F, F_in), lambda j: (j, 0)),   # w rows for this tile
                pl.BlockSpec((1, TILE_F), lambda j: (0, j)),      # gamma
                pl.BlockSpec((1, TILE_F), lambda j: (0, j)),      # beta
                pl.BlockSpec((N, TILE_F), lambda j: (0, j)),      # dropout factor
            ],
            out_specs=pl.BlockSpec((N, TILE_F), lambda j: (0, j)),
        ),
        compiler_params=pltpu.CompilerParams(
            dimension_semantics=("parallel",),  # F_out tiles are independent (BN is per-feature)
        ),
    )(x, w_p, gamma_p, beta_p, drop_factor)

    # TODO(synk): BatchNorm1d running_mean / running_var updates (training-mode side
    # effect of the torch module) are not computed or returned here.
    return out[:, :F_out]


if __name__ == "__main__":
    # Shapes implied by the module: Linear(inputs=32, outputs=16), small batch=8.
    N, F_in, F_out = 8, 32, 16
    key = jax.random.PRNGKey(0)
    kx, kw, kb, kd = jax.random.split(key, 4)

    x = jax.random.normal(kx, (N, F_in), dtype=jnp.float32)

    # Deterministic parameter init mirroring the module's __init__:
    # xavier_uniform_ for the linear weight, default uniform for bias,
    # BatchNorm1d gamma=1 / beta=0.
    xavier_bound = (6.0 / (F_in + F_out)) ** 0.5
    w = jax.random.uniform(kw, (F_out, F_in), minval=-xavier_bound,
                           maxval=xavier_bound, dtype=jnp.float32)
    bias_bound = 1.0 / (F_in ** 0.5)
    b = jax.random.uniform(kb, (F_out,), minval=-bias_bound,
                           maxval=bias_bound, dtype=jnp.float32)
    gamma = jnp.ones((F_out,), dtype=jnp.float32)
    beta = jnp.zeros((F_out,), dtype=jnp.float32)

    out = deep_search_linear(x, w, b, gamma, beta, dropout_key=kd)
    out = jax.block_until_ready(out)

    assert out.shape == (N, F_out) and out.dtype == jnp.float32
    assert bool(jnp.all(jnp.isfinite(out)))
    print("KERNEL_OK")
</pallas_src>

<mosaic_0001>
module attributes {stable_mosaic.version = 11 : i64} {
  func.func @deep_search_linear_kernel(%arg0: i32, %arg1: memref<8x32xf32, #tpu.memory_space<vmem>>, %arg2: memref<128x32xf32, #tpu.memory_space<vmem>>, %arg3: memref<1x128xf32, #tpu.memory_space<vmem>>, %arg4: memref<1x128xf32, #tpu.memory_space<vmem>>, %arg5: memref<8x128xf32, #tpu.memory_space<vmem>>, %arg6: memref<8x128xf32, #tpu.memory_space<vmem>>) attributes {dimension_semantics = [#tpu.dimension_semantics<parallel>], iteration_bounds = array<i64: 1>, scalar_prefetch = 0 : i64, scratch_operands = 0 : i64, tpu.core_type = #tpu.core_type<tc>, window_params = [{pipeline_mode = #tpu.pipeline_mode<synchronous>, transform_indices = @transform_0, window_bounds = array<i64: 8, 32>}, {transform_indices = @transform_1, window_bounds = array<i64: 128, 32>}, {transform_indices = @transform_2, window_bounds = array<i64: 1, 128>}, {transform_indices = @transform_3, window_bounds = array<i64: 1, 128>}, {transform_indices = @transform_4, window_bounds = array<i64: 8, 128>}, {transform_indices = @transform_5, window_bounds = array<i64: 8, 128>}]} {
    %c0 = arith.constant 0 : index
    %c0_0 = arith.constant 0 : index
    %0 = vector.load %arg1[%c0, %c0_0] : memref<8x32xf32, #tpu.memory_space<vmem>>, vector<8x32xf32>
    %c0_1 = arith.constant 0 : index
    %c0_2 = arith.constant 0 : index
    %1 = vector.load %arg2[%c0_1, %c0_2] : memref<128x32xf32, #tpu.memory_space<vmem>>, vector<128x32xf32>
    %cst = arith.constant dense<0.000000e+00> : vector<8x128xf32>
    %2 = tpu.matmul %0, %1, %cst {dimension_numbers = #tpu.dot_dimension_numbers<[1], [1], [0], [0], [0, 0, 1, 0], [], []>} : vector<8x32xf32>, vector<128x32xf32>, vector<8x128xf32> -> vector<8x128xf32>
    %cst_3 = arith.constant dense<0.000000e+00> : vector<128xf32>
    %3 = vector.multi_reduction <add>, %2, %cst_3 [0] : vector<8x128xf32> to vector<128xf32>
    %4 = vector.shape_cast %3 : vector<128xf32> to vector<1x128xf32>
    %cst_4 = arith.constant 1.250000e-01 : f32
    %5 = vector.broadcast %cst_4 : f32 to vector<1x128xf32>
    %6 = arith.mulf %4, %5 : vector<1x128xf32>
    %7 = arith.mulf %2, %2 : vector<8x128xf32>
    %cst_5 = arith.constant dense<0.000000e+00> : vector<128xf32>
    %8 = vector.multi_reduction <add>, %7, %cst_5 [0] : vector<8x128xf32> to vector<128xf32>
    %9 = vector.shape_cast %8 : vector<128xf32> to vector<1x128xf32>
    %cst_6 = arith.constant 1.250000e-01 : f32
    %10 = vector.broadcast %cst_6 : f32 to vector<1x128xf32>
    %11 = arith.mulf %9, %10 : vector<1x128xf32>
    %12 = arith.mulf %6, %6 : vector<1x128xf32>
    %13 = arith.subf %11, %12 : vector<1x128xf32>
    %cst_7 = arith.constant 0.000000e+00 : f32
    %14 = vector.broadcast %cst_7 : f32 to vector<1x128xf32>
    %15 = arith.maximumf %13, %14 : vector<1x128xf32>
    %c0_8 = arith.constant 0 : index
    %c0_9 = arith.constant 0 : index
    %16 = vector.load %arg3[%c0_8, %c0_9] : memref<1x128xf32, #tpu.memory_space<vmem>>, vector<1x128xf32>
    %cst_10 = arith.constant 9.99999974E-6 : f32
    %17 = vector.broadcast %cst_10 : f32 to vector<1x128xf32>
    %18 = arith.addf %15, %17 : vector<1x128xf32>
    %19 = math.rsqrt %18 : vector<1x128xf32>
    %20 = arith.mulf %16, %19 : vector<1x128xf32>
    %c0_11 = arith.constant 0 : index
    %c0_12 = arith.constant 0 : index
    %21 = vector.load %arg4[%c0_11, %c0_12] : memref<1x128xf32, #tpu.memory_space<vmem>>, vector<1x128xf32>
    %22 = arith.mulf %6, %20 : vector<1x128xf32>
    %23 = arith.subf %21, %22 : vector<1x128xf32>
    %24 = vector.broadcast %20 : vector<1x128xf32> to vector<8x128xf32>
    %25 = arith.mulf %2, %24 : vector<8x128xf32>
    %26 = vector.broadcast %23 : vector<1x128xf32> to vector<8x128xf32>
    %27 = arith.addf %25, %26 : vector<8x128xf32>
    %cst_13 = arith.constant 0.000000e+00 : f32
    %28 = vector.broadcast %cst_13 : f32 to vector<8x128xf32>
    %29 = arith.cmpf oge, %27, %28 : vector<8x128xf32>
    %cst_14 = arith.constant 0.00999999977 : f32
    %30 = vector.broadcast %cst_14 : f32 to vector<8x128xf32>
    %31 = arith.mulf %30, %27 : vector<8x128xf32>
    %32 = arith.select %29, %27, %31 : vector<8x128xi1>, vector<8x128xf32>
    %c0_15 = arith.constant 0 : index
    %c0_16 = arith.constant 0 : index
    %33 = vector.load %arg5[%c0_15, %c0_16] : memref<8x128xf32, #tpu.memory_space<vmem>>, vector<8x128xf32>
    %34 = arith.mulf %32, %33 : vector<8x128xf32>
    %c0_17 = arith.constant 0 : index
    %c0_18 = arith.constant 0 : index
    %35 = vector.load %arg6[%c0_17, %c0_18] : memref<8x128xf32, #tpu.memory_space<vmem>>, vector<8x128xf32>
    tpu.vector_store %arg6[%c0_17, %c0_18], %34 {strides = array<i32>} : memref<8x128xf32, #tpu.memory_space<vmem>>, vector<8x128xf32>,
    return
  }
  func.func @transform_0(%arg0: i32) -> (i32, i32) {
    %c0_i32 = arith.constant 0 : i32
    %c0_i32_0 = arith.constant 0 : i32
    %c0_i32_1 = arith.constant 0 : i32
    return %c0_i32, %c0_i32_0 : i32, i32
  }
  func.func @transform_1(%arg0: i32) -> (i32, i32) {
    %c0_i32 = arith.constant 0 : i32
    %c0_i32_0 = arith.constant 0 : i32
    return %arg0, %c0_i32 : i32, i32
  }
  func.func @transform_2(%arg0: i32) -> (i32, i32) {
    %c0_i32 = arith.constant 0 : i32
    %c0_i32_0 = arith.constant 0 : i32
    return %c0_i32, %arg0 : i32, i32
  }
  func.func @transform_3(%arg0: i32) -> (i32, i32) {
    %c0_i32 = arith.constant 0 : i32
    %c0_i32_0 = arith.constant 0 : i32
    return %c0_i32, %arg0 : i32, i32
  }
  func.func @transform_4(%arg0: i32) -> (i32, i32) {
    %c0_i32 = arith.constant 0 : i32
    %c0_i32_0 = arith.constant 0 : i32
    return %c0_i32, %arg0 : i32, i32
  }
  func.func @transform_5(%arg0: i32) -> (i32, i32) {
    %c0_i32 = arith.constant 0 : i32
    %c0_i32_0 = arith.constant 0 : i32
    return %c0_i32, %arg0 : i32, i32
  }
}

</mosaic_0001>

<bundles_post_ra>
// kernel: tpu_custom_call.1
= control target key start
LH: loop header
LB: loop body
LE: loop exit
PB: predicated region body
PF: predicated region fallthrough
CT: control target
= control target key end

     0   :  { %vm38_vm0 = vcmask 261120   ;;  %s331_s0 = inlined_call_operand.vmem [shape: f32[8,32], index: 0, kind: input, shape index: {}]   ;;  %s332_s1 = inlined_call_operand.vmem [shape: f32[128,32], index: 1, kind: input, shape index: {}]   ;;  %s333_s2 = inlined_call_operand.vmem [shape: f32[1,128], index: 2, kind: input, shape index: {}]   ;;  %s334_s3 = inlined_call_operand.vmem [shape: f32[1,128], index: 3, kind: input, shape index: {}]   ;;  %s335_s4 = inlined_call_operand.vmem [shape: f32[8,128], index: 4, kind: input, shape index: {}]   ;;  %s336_s5 = inlined_call_operand.hbm [shape: f32[8,128], index: 5, kind: output, shape index: {}]  }
   0x1   :  { %v37_v0 = vld [vmem:[%s332_s1 + $0x78] sm:$0xff]  ;;  %v36_v1 = vld [vmem:[%s332_s1 + $0x70] sm:$0xff] }
   0x2   :  { %174 = vmatpush.xpose.msk.msra.mxu0 %vm38_vm0, %v37_v0 }
   0x3   :  { %10 = vsyncpa [#allocation3], 0  ;;  %v35_v2 = vld [vmem:[%s332_s1 + $0x68] sm:$0xff]  ;;  %v34_v3 = vld [vmem:[%s332_s1 + $0x60] sm:$0xff]  ;;  %s165_s9 = sshll.u32 %s336_s5, 4  ;;  %s166_s9 = int_to_ptr.hbm [resolvable:$true] %s165_s9 }
   0x4   :  { %v33_v4 = vld [vmem:[%s332_s1 + $0x58] sm:$0xff]  ;;  %v32_v5 = vld [vmem:[%s332_s1 + $0x50] sm:$0xff]  ;;  %v31_v6 = vld [vmem:[%s332_s1 + $0x48] sm:$0xff] }
   0x5   :  { %v30_v7 = vld [vmem:[%s332_s1 + $0x40] sm:$0xff]  ;;  %v29_v8 = vld [vmem:[%s332_s1 + $0x38] sm:$0xff]  ;;  %v28_v9 = vld [vmem:[%s332_s1 + $0x30] sm:$0xff] }
   0x6   :  { %175 = vmatpush.xpose.msk.msra.mxu0 %vm38_vm0, %v36_v1  ;;  %v27_v10 = vld [vmem:[%s332_s1 + $0x28] sm:$0xff]  ;;  %v26_v11 = vld [vmem:[%s332_s1 + $0x20] sm:$0xff]  ;;  %v25_v12 = vld [vmem:[%s332_s1 + $0x18] sm:$0xff] }
   0x7   :  { %v24_v13 = vld [vmem:[%s332_s1 + $0x10] sm:$0xff]  ;;  %v23_v14 = vld [vmem:[%s332_s1 + $0x8] sm:$0xff]  ;;  %v22_v15 = vld [vmem:[%s332_s1] sm:$0xff] }
   0x8   :  { %v21_v16 = vld [vmem:[%s331_s0] sm:$0xff] }
   0x9   :  { %v128_v42 = vld [vmem:[%s333_s2] sm:$0x1]  ;;  %s220_s2 = smov [#allocation2]  }
   0xa   :  { %176 = vmatpush.xpose.msk.msra.mxu0 %vm38_vm0, %v35_v2  ;;  %v141_v46 = vld [vmem:[%s334_s3] sm:$0x1]  ;;  %s163_s6 = sshll.u32 %s220_s2, 4  ;;  %s164_s6 = int_to_ptr.vmem [resolvable:$true] %s163_s6 }
   0xb   :  { %v155_v54 = vld [vmem:[%s335_s4] sm:$0xff] }
   0xe   :  { %177 = vmatpush.xpose.msk.msra.mxu0 %vm38_vm0, %v34_v3 }
  0x12   :  { %178 = vmatpush.xpose.msk.msra.mxu0 %vm38_vm0, %v33_v4 }
  0x16   :  { %179 = vmatpush.xpose.msk.msra.mxu0 %vm38_vm0, %v32_v5 }
  0x1a   :  { %180 = vmatpush.xpose.msk.msra.mxu0 %vm38_vm0, %v31_v6 }
  0x1e   :  { %181 = vmatpush.xpose.msk.msra.mxu0 %vm38_vm0, %v30_v7 }
  0x22   :  { %182 = vmatpush.xpose.msk.msra.mxu0 %vm38_vm0, %v29_v8 }
  0x26   :  { %183 = vmatpush.xpose.msk.msra.mxu0 %vm38_vm0, %v28_v9 }
  0x2a   :  { %184 = vmatpush.xpose.msk.msra.mxu0 %vm38_vm0, %v27_v10 }
  0x2e   :  { %185 = vmatpush.xpose.msk.msra.mxu0 %vm38_vm0, %v26_v11 }
  0x32   :  { %186 = vmatpush.xpose.msk.msra.mxu0 %vm38_vm0, %v25_v12 }
  0x36   :  { %187 = vmatpush.xpose.msk.msra.mxu0 %vm38_vm0, %v24_v13 }
  0x3a   :  { %188 = vmatpush.xpose.msk.msra.mxu0 %vm38_vm0, %v23_v14 }
  0x3e   :  { %189 = vmatpush.xpose.msk.msra.mxu0 %vm38_vm0, %v22_v15 }
  0x41   :  { %190 = vmatmul.msk.f32.vlgmr.msra.gmra.mxu0 %vm38_vm0, %v21_v16 }
  0xbe   :  { %v107_v17 = vpop.f32.mrf.mxu0 }
  0xbf   :  { %v110_v18 = vrot.slane %v107_v17, 4  ;;  %v117_v19 = vmul.f32 %v107_v17, %v107_v17 }
  0xc1   :  { %v111_v20 = vadd.f32 %v110_v18, %v107_v17  ;;  %v118_v21 = vrot.slane %v117_v19, 4 }
  0xc3   :  { %v112_v22 = vrot.slane %v111_v20, 2  ;;  %v119_v23 = vadd.f32 %v118_v21, %v117_v19 }
  0xc5   :  { %v113_v24 = vadd.f32 %v112_v22, %v111_v20  ;;  %v120_v25 = vrot.slane %v119_v23, 2 }
  0xc7   :  { %v114_v26 = vrot.slane %v113_v24, 1  ;;  %v121_v27 = vadd.f32 %v120_v25, %v119_v23 }
  0xc9   :  { %v115_v28 = vadd.f32 %v114_v26, %v113_v24  ;;  %v122_v29 = vrot.slane %v121_v27, 1 }
  0xcb   :  { %v116_v30 = vmul.f32 0.125, %v115_v28  ;;  %v123_v31 = vadd.f32 %v122_v29, %v121_v27 }
  0xcd   :  { %v124_v32 = vmul.f32 0.125, %v123_v31  ;;  %v125_v33 = vmul.f32 %v116_v30, %v116_v30 }
  0xcf   :  { %v126_v34 = vsub.f32 %v124_v32, %v125_v33 }
  0xd1   :  { %v127_v35 = vmax.f32 %v126_v34, 0.0 }
  0xd3   :  { %v129_v36 = vadd.f32 1e-05, %v127_v35 }
  0xd5   :  { %192 = vrsqrt.f32 %v129_v36  ;;  %vm136_vm2 = vweird.f32 %v129_v36 }
  0xdb   :  { %v193_v37 = vpop.eup %192 }
  0xdc   :  { %v131_v38 = vmul.f32 %v193_v37, %v129_v36  ;;  %vm137_vm1 = vweird.f32 %v193_v37 }
  0xdd   :  { %vm138_vm3 = vmor %vm136_vm2, %vm137_vm1 }
  0xde   :  { %v132_v39 = vmul.f32 %v193_v37, %v131_v38 }
  0xe0   :  { %v133_v40 = vmul.f32 0.5, %v132_v39 }
  0xe2   :  { %v134_v41 = vsub.f32 1.5, %v133_v40 }
  0xe4   :  { %v135_v43 = vmul.f32 %v193_v37, %v134_v41 }
  0xe6   :  { %v139_v44 = vsel %vm138_vm3, %v193_v37, %v135_v43 }
  0xe7   :  { %v140_v45 = vmul.f32 %v139_v44, %v128_v42 }
  0xe9   :  { %v142_v47 = vmul.f32 %v140_v45, %v116_v30  ;;  %v145_v48 = vperm.slane %v140_v45, 0 }
  0xeb   :  { %v143_v49 = vsub.f32 %v141_v46, %v142_v47  ;;  %v147_v50 = vmul.f32 %v145_v48, %v107_v17 }
  0xed   :  { %v149_v51 = vperm.slane %v143_v49, 0 }
  0xef   :  { %v151_v52 = vadd.f32 %v149_v51, %v147_v50 }
  0xf1   :  { %vm152_vm4 = vcmp.ge.f32.partialorder %v151_v52, 0.0  ;;  %v153_v53 = vmul.f32 0.01, %v151_v52 }
  0xf3   :  { %v154_v55 = vsel %vm152_vm4, %v151_v52, %v153_v53 }
  0xf4   :  { %v156_v56 = vmul.f32 %v155_v54, %v154_v55 }
  0xf6   :  { %157 = vst [vmem:[#allocation2] sm:$0xff] %v156_v56 }
  0xf7   :  { %168 = dma.vmem_to_hbm [thread:$0]  %s164_s6, 128, %s166_s9, [#allocation3]  }
  0xf8   :  { %218 = dma.done.wait [#allocation3], 128  }
  0xf9   :  { %219 = vsyncadd [#allocation3], 4294967168 }
  0xfa   :  { %173 = vsyncpa [#allocation3], 1 }

</bundles_post_ra>
